<compile_context>
chip_gen: v6e
topology: v6e:2x2x1
jax: 0.10.0
libtpu: 0.0.40
codegen_flags: <defaults>
</compile_context>

<pallas_src>
import math

import jax
import jax.numpy as jnp
from jax.experimental import pallas as pl
from jax.experimental.pallas import tpu as pltpu

PACK = 16  # points packed per matmul row; 16 -> output lane width 16*8 = 128 (dense)


def _mlp_kernel(x_ref, w1_ref, b1_ref, w2_ref, b2_ref, w3_ref, b3_ref, o_ref):
    # layer 1: Linear + ReLU (packed: (tile, 4p) @ (4p, 32p))
    h = jnp.dot(x_ref[...], w1_ref[...], preferred_element_type=jnp.float32)
    h = jnp.maximum(h + b1_ref[...], 0.0)
    # layer 2: Linear + ReLU (packed: (tile, 32p) @ (32p, 32p))
    h = jnp.dot(h, w2_ref[...], preferred_element_type=jnp.float32)
    h = jnp.maximum(h + b2_ref[...], 0.0)
    # layer 3 (outermost_linear=True): Linear, no activation ((tile, 32p) @ (32p, 8p))
    o = jnp.dot(h, w3_ref[...], preferred_element_type=jnp.float32)
    o_ref[...] = (o + b3_ref[...]).astype(o_ref.dtype)


def _pack_block_diag(w, p):
    """(k, n) -> (k*p, n*p) with p copies of `w` on the block diagonal."""
    k, n = w.shape
    eye = jnp.eye(p, dtype=w.dtype)
    return jnp.einsum("pq,kn->pkqn", eye, w).reshape(k * p, n * p)


def mlp_block_forward(x, params, *, tile_rows=512, pack=PACK):
    """x: (..., in_features) float32.  params: dict of W1,b1,W2,b2,W3,b3."""
    in_features = params["W1"].shape[0]
    hidden = params["W1"].shape[1]
    out_features = params["W3"].shape[1]

    lead_shape = x.shape[:-1]
    x2d = x.reshape(-1, in_features).astype(jnp.float32)
    M = x2d.shape[0]

    # Pad rows so the packed view has a sublane-friendly (multiple of 8) row count.
    row_align = pack * 8
    M_pad = ((M + row_align - 1) // row_align) * row_align
    if M_pad != M:
        x2d = jnp.pad(x2d, ((0, M_pad - M), (0, 0)))
    Mp = M_pad // pack  # packed rows (multiple of 8)

    # Free contiguous reshape: pack `pack` consecutive points into one matmul row.
    xp = x2d.reshape(Mp, pack * in_features)

    # Block-diagonal packed weights + tiled biases.
    W1p = _pack_block_diag(params["W1"], pack)          # (4p, 32p)
    W2p = _pack_block_diag(params["W2"], pack)          # (32p, 32p)
    W3p = _pack_block_diag(params["W3"], pack)          # (32p, 8p)
    b1p = jnp.tile(params["b1"], (1, pack))             # (1, 32p)
    b2p = jnp.tile(params["b2"], (1, pack))             # (1, 32p)
    b3p = jnp.tile(params["b3"], (1, pack))             # (1, 8p)

    kin = pack * in_features
    khid = pack * hidden
    kout = pack * out_features

    # Row tile: multiple of 8, no bigger than the packed row count.
    tile_rows = max(8, (int(tile_rows) + 7) // 8 * 8)
    tile = min(tile_rows, Mp)
    grid = (pl.cdiv(Mp, tile),)  # partial last block handled by Pallas

    full = lambda shape: pl.BlockSpec(shape, lambda i: (0, 0))  # constant across grid

    outp = pl.pallas_call(
        _mlp_kernel,
        out_shape=jax.ShapeDtypeStruct((Mp, kout), jnp.float32),
        grid_spec=pltpu.PrefetchScalarGridSpec(
            num_scalar_prefetch=0,
            grid=grid,
            in_specs=[
                pl.BlockSpec((tile, kin), lambda i: (i, 0)),  # packed x tile
                full((kin, khid)),    # W1 packed
                full((1, khid)),      # b1 packed
                full((khid, khid)),   # W2 packed
                full((1, khid)),      # b2 packed
                full((khid, kout)),   # W3 packed
                full((1, kout)),      # b3 packed
            ],
            out_specs=pl.BlockSpec((tile, kout), lambda i: (i, 0)),  # lane-dense (128)
        ),
        compiler_params=pltpu.CompilerParams(
            dimension_semantics=("parallel",),  # shard grid steps across v7x's 2 TCs
        ),
    )(xp, W1p, b1p, W2p, b2p, W3p, b3p)

    # Free reshape back: (Mp, pack*out) -> (M_pad, out), drop pad rows.
    out2d = outp.reshape(M_pad, out_features)[:M]
    return out2d.reshape(*lead_shape, out_features)


def init_mlp_params(key, in_features, hidden_features, out_features):
    """Kaiming-normal init (std=sqrt(2/fan_in)), zero bias — matches
    layer_utils.init_weights_normal used for 'relu'.  Weights stored (fan_in, fan_out)
    so the kernel computes x @ W + b (== x @ W_torch.T + b)."""
    k1, k2, k3 = jax.random.split(key, 3)

    def kaiming(k, fan_in, fan_out):
        std = math.sqrt(2.0 / fan_in)
        return jax.random.normal(k, (fan_in, fan_out), jnp.float32) * std

    return {
        "W1": kaiming(k1, in_features, hidden_features),
        "b1": jnp.zeros((1, hidden_features), jnp.float32),
        "W2": kaiming(k2, hidden_features, hidden_features),
        "b2": jnp.zeros((1, hidden_features), jnp.float32),
        "W3": kaiming(k3, hidden_features, out_features),
        "b3": jnp.zeros((1, out_features), jnp.float32),
    }


def mlp_reference(x, params):
    h = jnp.maximum(x @ params["W1"] + params["b1"], 0.0)
    h = jnp.maximum(h @ params["W2"] + params["b2"], 0.0)
    return h @ params["W3"] + params["b3"]


if __name__ == "__main__":
    # Small shapes consistent with the module's forward:
    # batch=2, num_points=64, in_features=4, hidden=32, out=8
    in_features, hidden_features, out_features = 4, 32, 8

    key = jax.random.PRNGKey(0)
    kp, kx, kx2 = jax.random.split(key, 3)

    params = init_mlp_params(kp, in_features, hidden_features, out_features)

    # main check: aligned row count
    x = jax.random.normal(kx, (2, 64, in_features), jnp.float32)
    out = jax.block_until_ready(mlp_block_forward(x, params))
    ref = mlp_reference(x.reshape(-1, in_features), params).reshape(out.shape)
    assert out.shape == (2, 64, out_features)
    assert jnp.allclose(out, ref, atol=1e-4, rtol=1e-4)

    # robustness check: row count not a multiple of the pack/tile (no hard assert now)
    x_odd = jax.random.normal(kx2, (3, 37, in_features), jnp.float32)
    out_odd = jax.block_until_ready(mlp_block_forward(x_odd, params))
    ref_odd = mlp_reference(x_odd.reshape(-1, in_features), params).reshape(out_odd.shape)
    assert out_odd.shape == (3, 37, out_features)
    assert jnp.allclose(out_odd, ref_odd, atol=1e-4, rtol=1e-4)

    # TODO(synk): use_nerv_block=True branch (Reshape + Conv2d 3x3 + PixelShuffle +
    # final activation) is not exercised here; only the standard MLP path is implemented.
    print("KERNEL_OK")
</pallas_src>

<mosaic_0001>
module attributes {stable_mosaic.version = 11 : i64} {
  func.func @_mlp_kernel(%arg0: i32, %arg1: memref<8x64xf32, #tpu.memory_space<vmem>>, %arg2: memref<64x512xf32, #tpu.memory_space<vmem>>, %arg3: memref<1x512xf32, #tpu.memory_space<vmem>>, %arg4: memref<512x512xf32, #tpu.memory_space<vmem>>, %arg5: memref<1x512xf32, #tpu.memory_space<vmem>>, %arg6: memref<512x128xf32, #tpu.memory_space<vmem>>, %arg7: memref<1x128xf32, #tpu.memory_space<vmem>>, %arg8: memref<8x128xf32, #tpu.memory_space<vmem>>) attributes {dimension_semantics = [#tpu.dimension_semantics<parallel>], iteration_bounds = array<i64: 1>, scalar_prefetch = 0 : i64, scratch_operands = 0 : i64, tpu.core_type = #tpu.core_type<tc>, window_params = [{transform_indices = @transform_0, window_bounds = array<i64: 8, 64>}, {pipeline_mode = #tpu.pipeline_mode<synchronous>, transform_indices = @transform_1, window_bounds = array<i64: 64, 512>}, {pipeline_mode = #tpu.pipeline_mode<synchronous>, transform_indices = @transform_2, window_bounds = array<i64: 1, 512>}, {pipeline_mode = #tpu.pipeline_mode<synchronous>, transform_indices = @transform_3, window_bounds = array<i64: 512, 512>}, {pipeline_mode = #tpu.pipeline_mode<synchronous>, transform_indices = @transform_4, window_bounds = array<i64: 1, 512>}, {pipeline_mode = #tpu.pipeline_mode<synchronous>, transform_indices = @transform_5, window_bounds = array<i64: 512, 128>}, {pipeline_mode = #tpu.pipeline_mode<synchronous>, transform_indices = @transform_6, window_bounds = array<i64: 1, 128>}, {transform_indices = @transform_7, window_bounds = array<i64: 8, 128>}]} {
    %c0 = arith.constant 0 : index
    %c0_0 = arith.constant 0 : index
    %0 = vector.load %arg1[%c0, %c0_0] : memref<8x64xf32, #tpu.memory_space<vmem>>, vector<8x64xf32>
    %c0_1 = arith.constant 0 : index
    %c0_2 = arith.constant 0 : index
    %1 = vector.load %arg2[%c0_1, %c0_2] : memref<64x512xf32, #tpu.memory_space<vmem>>, vector<64x512xf32>
    %cst = arith.constant dense<0.000000e+00> : vector<8x512xf32>
    %2 = tpu.matmul %0, %1, %cst {dimension_numbers = #tpu.dot_dimension_numbers<[1], [0], [0], [1], [0, 0, 1, 1], [], []>} : vector<8x64xf32>, vector<64x512xf32>, vector<8x512xf32> -> vector<8x512xf32>
    %c0_3 = arith.constant 0 : index
    %c0_4 = arith.constant 0 : index
    %3 = vector.load %arg3[%c0_3, %c0_4] : memref<1x512xf32, #tpu.memory_space<vmem>>, vector<1x512xf32>
    %4 = vector.broadcast %3 : vector<1x512xf32> to vector<8x512xf32>
    %5 = arith.addf %2, %4 : vector<8x512xf32>
    %cst_5 = arith.constant 0.000000e+00 : f32
    %6 = vector.broadcast %cst_5 : f32 to vector<8x512xf32>
    %7 = arith.maximumf %5, %6 : vector<8x512xf32>
    %c0_6 = arith.constant 0 : index
    %c0_7 = arith.constant 0 : index
    %8 = vector.load %arg4[%c0_6, %c0_7] : memref<512x512xf32, #tpu.memory_space<vmem>>, vector<512x512xf32>
    %cst_8 = arith.constant dense<0.000000e+00> : vector<8x512xf32>
    %9 = tpu.matmul %7, %8, %cst_8 {dimension_numbers = #tpu.dot_dimension_numbers<[1], [0], [0], [1], [0, 0, 1, 1], [], []>} : vector<8x512xf32>, vector<512x512xf32>, vector<8x512xf32> -> vector<8x512xf32>
    %c0_9 = arith.constant 0 : index
    %c0_10 = arith.constant 0 : index
    %10 = vector.load %arg5[%c0_9, %c0_10] : memref<1x512xf32, #tpu.memory_space<vmem>>, vector<1x512xf32>
    %11 = vector.broadcast %10 : vector<1x512xf32> to vector<8x512xf32>
    %12 = arith.addf %9, %11 : vector<8x512xf32>
    %cst_11 = arith.constant 0.000000e+00 : f32
    %13 = vector.broadcast %cst_11 : f32 to vector<8x512xf32>
    %14 = arith.maximumf %12, %13 : vector<8x512xf32>
    %c0_12 = arith.constant 0 : index
    %c0_13 = arith.constant 0 : index
    %15 = vector.load %arg6[%c0_12, %c0_13] : memref<512x128xf32, #tpu.memory_space<vmem>>, vector<512x128xf32>
    %cst_14 = arith.constant dense<0.000000e+00> : vector<8x128xf32>
    %16 = tpu.matmul %14, %15, %cst_14 {dimension_numbers = #tpu.dot_dimension_numbers<[1], [0], [0], [1], [0, 0, 1, 1], [], []>} : vector<8x512xf32>, vector<512x128xf32>, vector<8x128xf32> -> vector<8x128xf32>
    %c0_15 = arith.constant 0 : index
    %c0_16 = arith.constant 0 : index
    %17 = vector.load %arg7[%c0_15, %c0_16] : memref<1x128xf32, #tpu.memory_space<vmem>>, vector<1x128xf32>
    %18 = vector.broadcast %17 : vector<1x128xf32> to vector<8x128xf32>
    %19 = arith.addf %16, %18 : vector<8x128xf32>
    %c0_17 = arith.constant 0 : index
    %c0_18 = arith.constant 0 : index
    %20 = vector.load %arg8[%c0_17, %c0_18] : memref<8x128xf32, #tpu.memory_space<vmem>>, vector<8x128xf32>
    tpu.vector_store %arg8[%c0_17, %c0_18], %19 {strides = array<i32>} : memref<8x128xf32, #tpu.memory_space<vmem>>, vector<8x128xf32>,
    return
  }
  func.func @transform_0(%arg0: i32) -> (i32, i32) {
    %c0_i32 = arith.constant 0 : i32
    %c0_i32_0 = arith.constant 0 : i32
    return %arg0, %c0_i32 : i32, i32
  }
  func.func @transform_1(%arg0: i32) -> (i32, i32) {
    %c0_i32 = arith.constant 0 : i32
    %c0_i32_0 = arith.constant 0 : i32
    %c0_i32_1 = arith.constant 0 : i32
    return %c0_i32, %c0_i32_0 : i32, i32
  }
  func.func @transform_2(%arg0: i32) -> (i32, i32) {
    %c0_i32 = arith.constant 0 : i32
    %c0_i32_0 = arith.constant 0 : i32
    %c0_i32_1 = arith.constant 0 : i32
    return %c0_i32, %c0_i32_0 : i32, i32
  }
  func.func @transform_3(%arg0: i32) -> (i32, i32) {
    %c0_i32 = arith.constant 0 : i32
    %c0_i32_0 = arith.constant 0 : i32
    %c0_i32_1 = arith.constant 0 : i32
    return %c0_i32, %c0_i32_0 : i32, i32
  }
  func.func @transform_4(%arg0: i32) -> (i32, i32) {
    %c0_i32 = arith.constant 0 : i32
    %c0_i32_0 = arith.constant 0 : i32
    %c0_i32_1 = arith.constant 0 : i32
    return %c0_i32, %c0_i32_0 : i32, i32
  }
  func.func @transform_5(%arg0: i32) -> (i32, i32) {
    %c0_i32 = arith.constant 0 : i32
    %c0_i32_0 = arith.constant 0 : i32
    %c0_i32_1 = arith.constant 0 : i32
    return %c0_i32, %c0_i32_0 : i32, i32
  }
  func.func @transform_6(%arg0: i32) -> (i32, i32) {
    %c0_i32 = arith.constant 0 : i32
    %c0_i32_0 = arith.constant 0 : i32
    %c0_i32_1 = arith.constant 0 : i32
    return %c0_i32, %c0_i32_0 : i32, i32
  }
  func.func @transform_7(%arg0: i32) -> (i32, i32) {
    %c0_i32 = arith.constant 0 : i32
    %c0_i32_0 = arith.constant 0 : i32
    return %arg0, %c0_i32 : i32, i32
  }
}

</mosaic_0001>

<bundles_post_ra>
// kernel: tpu_custom_call.1
= control target key start
LH: loop header
LB: loop body
LE: loop exit
PB: predicated region body
PF: predicated region fallthrough
CT: control target
= control target key end

     0   :  { %12 = vsyncpa [#allocation3], 0  ;;  %s1414_s0 = inlined_call_operand.hbm [shape: f32[8,64], index: 0, kind: input, shape index: {}]   ;;  %s1415_s1 = inlined_call_operand.hbm [shape: f32[64,512], index: 1, kind: input, shape index: {}]   ;;  %s1416_s2 = inlined_call_operand.hbm [shape: f32[1,512], index: 2, kind: input, shape index: {}]   ;;  %s1417_s3 = inlined_call_operand.hbm [shape: f32[512,512], index: 3, kind: input, shape index: {}]   ;;  %s1418_s4 = inlined_call_operand.vmem [shape: f32[1,512], index: 4, kind: input, shape index: {}]   ;;  %s1419_s5 = inlined_call_operand.hbm [shape: f32[512,128], index: 5, kind: input, shape index: {}]   ;;  %s1420_s6 = inlined_call_operand.vmem [shape: f32[1,128], index: 6, kind: input, shape index: {}]   ;;  %s1421_s7 = inlined_call_operand.hbm [shape: f32[8,128], index: 7, kind: output, shape index: {}]  }
   0x1   :  { %13 = vsyncpa [#allocation6], 0 }
   0x2   :  { %14 = vsyncpa [#allocation9], 0 }
   0x3   :  { %15 = vsyncpa [#allocation4], 0  ;;  %s1303_s24 = smov [#allocation5]  }
   0x4   :  { %s31_s25 = sshll.u32 %s1303_s24, 4  ;;  %s32_s25 = int_to_ptr.vmem [resolvable:$true] %s31_s25 }
   0x5   :  { %s1183_s26 = scalar_lea.vmem %s32_s25, 4096  ;;  %p1188_p1 = scmp.lt.s32.totalorder %s32_s25, %s32_s25 }
   0x6   :  { %p1184_p0 = scmp.ne.s32.totalorder %s32_s25, %s1183_s26  ;;  %p1189_p2 = scmp.lt.s32.totalorder %s1183_s26, %s1183_s26 }
   0x8   :  { %p1190_p3 = por %p1189_p2, %p1188_p1 }
   0xa   :  { %p1191_p4 = pnand %p1190_p3, %p1184_p0 }
   0xc   :  { %1194 = shalt.err (!%p1191_p4)
}
   0xd   :  { %s1304_s27 = smov 512   ;;  %s1305_s28 = smov 32  }
   0xe   :  { %37 = dma.hbm_to_vmem [thread:$0]  %s1415_s1, 4096, %s32_s25, [#allocation6], %s1304_s27, %s1304_s27, %s1305_s28  }
   0xf   :  { %s1306_s8 = smov [#allocation8]   ;;  %s1307_s10 = smov [#allocation2]  }
  0x10   :  { %s53_s9 = sshll.u32 %s1306_s8, 4  ;;  %s22_s11 = sshll.u32 %s1307_s10, 4  ;;  %s54_s9 = int_to_ptr.vmem [resolvable:$true] %s53_s9  ;;  %s23_s11 = int_to_ptr.vmem [resolvable:$true] %s22_s11 }
  0x11   :  { %s1203_s12 = scalar_lea.vmem %s54_s9, 32768  ;;  %p1208_p6 = scmp.lt.s32.totalorder %s54_s9, %s54_s9 }
  0x12   :  { %p1204_p5 = scmp.ne.s32.totalorder %s54_s9, %s1203_s12  ;;  %p1209_p7 = scmp.lt.s32.totalorder %s1203_s12, %s1203_s12 }
  0x14   :  { %p1210_p8 = por %p1209_p7, %p1208_p6 }
  0x16   :  { %p1211_p9 = pnand %p1210_p8, %p1204_p5 }
  0x18   :  { %1214 = shalt.err (!%p1211_p9)
}
  0x19   :  { %59 = dma.hbm_to_vmem [thread:$0]  %s1417_s3, 32768, %s54_s9, [#allocation9], %s1304_s27, %s1304_s27, %s1305_s28  }
  0x1a   :  { %s1223_s15 = scalar_lea.vmem %s23_s11, 128  ;;  %p1228_p11 = scmp.lt.s32.totalorder %s23_s11, %s23_s11 }
  0x1b   :  { %p1224_p10 = scmp.ne.s32.totalorder %s23_s11, %s1223_s15  ;;  %p1229_p12 = scmp.lt.s32.totalorder %s1223_s15, %s1223_s15 }
  0x1d   :  { %p1230_p13 = por %p1229_p12, %p1228_p11 }
  0x1f   :  { %p1231_p0 = pnand %p1230_p13, %p1224_p10 }
  0x21   :  { %1234 = shalt.err (!%p1231_p0)
}
  0x22   :  { %25 = dma.hbm_to_vmem [thread:$0]  %s1414_s0, 128, %s23_s11, [#allocation3]  }
  0x23   :  { %s1308_s17 = smov [#allocation7]   ;;  %s1309_s19 = smov [#allocation10]  }
  0x24   :  { %s44_s18 = sshll.u32 %s1308_s17, 4  ;;  %s67_s20 = sshll.u32 %s1309_s19, 4  ;;  %s45_s18 = int_to_ptr.vmem [resolvable:$true] %s44_s18  ;;  %s68_s20 = int_to_ptr.vmem [resolvable:$true] %s67_s20 }
  0x25   :  { %s1243_s21 = scalar_lea.vmem %s45_s18, 64  ;;  %p1248_p2 = scmp.lt.s32.totalorder %s45_s18, %s45_s18 }
  0x26   :  { %p1244_p1 = scmp.ne.s32.totalorder %s45_s18, %s1243_s21  ;;  %p1249_p3 = scmp.lt.s32.totalorder %s1243_s21, %s1243_s21 }
  0x28   :  { %p1250_p4 = por %p1249_p3, %p1248_p2 }
  0x2a   :  { %p1251_p5 = pnand %p1250_p4, %p1244_p1 }
  0x2c   :  { %1254 = shalt.err (!%p1251_p5)
}
  0x2d   :  { %47 = dma.hbm_to_vmem [thread:$0]  %s1416_s2, 64, %s45_s18, [#allocation6]  }
  0x2e   :  { %s1263_s23 = scalar_lea.vmem %s68_s20, 8192  ;;  %p1268_p7 = scmp.lt.s32.totalorder %s68_s20, %s68_s20 }
  0x2f   :  { %p1264_p6 = scmp.ne.s32.totalorder %s68_s20, %s1263_s23  ;;  %p1269_p8 = scmp.lt.s32.totalorder %s1263_s23, %s1263_s23 }
  0x31   :  { %p1270_p9 = por %p1269_p8, %p1268_p7 }
  0x33   :  { %p1271_p10 = pnand %p1270_p9, %p1264_p6 }
  0x35   :  { %1274 = shalt.err (!%p1271_p10)
}
  0x36   :  { %s1310_s0 = smov 128   ;;  %s1311_s24 = smov 8  }
  0x37   :  { %73 = dma.hbm_to_vmem [thread:$0]  %s1419_s5, 8192, %s68_s20, [#allocation9], %s1310_s0, %s1310_s0, %s1311_s24  }
  0x38   :  { %1295 = dma.done.wait [#allocation3], 128  }
  0x39   :  { %1296 = vsyncadd [#allocation3], 4294967168 }
  0x3a   :  { %1297 = dma.done.wait [#allocation6], 4160  }
  0x3b   :  { %1298 = vsyncadd [#allocation6], 4294963136 }
  0x3c   :  { %1299 = dma.done.wait [#allocation9], 40960  }
  0x3d   :  { %1300 = vsyncadd [#allocation9], 4294926336  ;;  %v1312_v0 = vmov 0.0   ;;  %v121_v1 = vld [vmem:[#allocation5 + $0xe8] sm:$0xff]  ;;  %v123_v2 = vld [vmem:[#allocation5 + $0xf8] sm:$0xff]  ;;  %vm146_vm0 = vcmask 523264  }
  0x3e   :  { %214 = vmatprep.mubr.f32.mxu0 %v1312_v0  ;;  %285 = vmatprep.mubr.f32.mxu1 %v1312_v0  ;;  %v120_v3 = vld [vmem:[#allocation5 + $0xe0] sm:$0xff]  ;;  %v122_v4 = vld [vmem:[#allocation5 + $0xf0] sm:$0xff]  ;;  %v117_v5 = vld [vmem:[#allocation5 + $0xc8] sm:$0xff]  ;;  %s1313_s28 = smov [#allocation11]  }
  0x3f   :  { %166 = vmatprep.subr.mxu0 %v121_v1  ;;  %237 = vmatprep.subr.mxu1 %v123_v2  ;;  %v119_v6 = vld [vmem:[#allocation5 + $0xd8] sm:$0xff]  ;;  %v116_v7 = vld [vmem:[#allocation5 + $0xc0] sm:$0xff]  ;;  %v118_v8 = vld [vmem:[#allocation5 + $0xd0] sm:$0xff]  ;;  %s1080_s29 = sshll.u32 %s1313_s28, 4  ;;  %s1081_s29 = int_to_ptr.vmem [resolvable:$true] %s1080_s29 }
  0x40   :  { %167 = vmatpush1.msra.mxu0 %v120_v3  ;;  %238 = vmatpush1.msra.mxu1 %v122_v4  ;;  %v113_v9 = vld [vmem:[#allocation5 + $0xa8] sm:$0xff]  ;;  %v115_v10 = vld [vmem:[#allocation5 + $0xb8] sm:$0xff]  ;;  %v112_v11 = vld [vmem:[#allocation5 + $0xa0] sm:$0xff]  ;;  %s1275_s30 = scalar_lea.vmem %s1081_s29, 128  ;;  %p1280_p12 = scmp.lt.s32.totalorder %s1081_s29, %s1081_s29 }
  0x41   :  { %168 = vmatprep.subr.mxu0 %v117_v5  ;;  %239 = vmatprep.subr.mxu1 %v119_v6  ;;  %v114_v12 = vld [vmem:[#allocation5 + $0xb0] sm:$0xff]  ;;  %v109_v13 = vld [vmem:[#allocation5 + $0x88] sm:$0xff]  ;;  %v111_v14 = vld [vmem:[#allocation5 + $0x98] sm:$0xff]  ;;  %p1276_p11 = scmp.ne.s32.totalorder %s1081_s29, %s1275_s30  ;;  %p1281_p13 = scmp.lt.s32.totalorder %s1275_s30, %s1275_s30 }
  0x42   :  { %169 = vmatpush1.msra.mxu0 %v116_v7  ;;  %240 = vmatpush1.msra.mxu1 %v118_v8  ;;  %v108_v15 = vld [vmem:[#allocation5 + $0x80] sm:$0xff]  ;;  %v110_v16 = vld [vmem:[#allocation5 + $0x90] sm:$0xff]  ;;  %v105_v17 = vld [vmem:[#allocation5 + $0x68] sm:$0xff] }
  0x43   :  { %170 = vmatprep.subr.mxu0 %v113_v9  ;;  %241 = vmatprep.subr.mxu1 %v115_v10  ;;  %v107_v18 = vld [vmem:[#allocation5 + $0x78] sm:$0xff]  ;;  %v104_v19 = vld [vmem:[#allocation5 + $0x60] sm:$0xff]  ;;  %v106_v20 = vld [vmem:[#allocation5 + $0x70] sm:$0xff]  ;;  %p1282_p0 = por %p1281_p13, %p1280_p12 }
  0x44   :  { %171 = vmatpush1.msra.mxu0 %v112_v11  ;;  %242 = vmatpush1.msra.mxu1 %v114_v12  ;;  %v101_v21 = vld [vmem:[#allocation5 + $0x48] sm:$0xff]  ;;  %v103_v22 = vld [vmem:[#allocation5 + $0x58] sm:$0xff]  ;;  %v100_v23 = vld [vmem:[#allocation5 + $0x40] sm:$0xff] }
  0x45   :  { %172 = vmatprep.subr.mxu0 %v109_v13  ;;  %243 = vmatprep.subr.mxu1 %v111_v14  ;;  %v102_v24 = vld [vmem:[#allocation5 + $0x50] sm:$0xff]  ;;  %v97_v25 = vld [vmem:[#allocation5 + $0x28] sm:$0xff]  ;;  %v99_v26 = vld [vmem:[#allocation5 + $0x38] sm:$0xff]  ;;  %p1283_p1 = pnand %p1282_p0, %p1276_p11 }
  0x46   :  { %173 = vmatpush1.msra.mxu0 %v108_v15  ;;  %244 = vmatpush1.msra.mxu1 %v110_v16  ;;  %v96_v27 = vld [vmem:[#allocation5 + $0x20] sm:$0xff]  ;;  %v98_v28 = vld [vmem:[#allocation5 + $0x30] sm:$0xff]  ;;  %v93_v29 = vld [vmem:[#allocation5 + $0x8] sm:$0xff] }
  0x47   :  { %174 = vmatprep.subr.mxu0 %v105_v17  ;;  %245 = vmatprep.subr.mxu1 %v107_v18  ;;  %v95_v30 = vld [vmem:[#allocation5 + $0x18] sm:$0xff]  ;;  %v92_v31 = vld [vmem:[#allocation5] sm:$0xff]  ;;  %v94_v32 = vld [vmem:[#allocation5 + $0x10] sm:$0xff] }
  0x48   :  { %175 = vmatpush1.msra.mxu0 %v104_v19  ;;  %246 = vmatpush1.msra.mxu1 %v106_v20  ;;  %v91_v33 = vld [vmem:[#allocation2] sm:$0xff]  ;;  %v357_v34 = vld [vmem:[#allocation8 + $0x1e8] sm:$0xff]  ;;  %v356_v36 = vld [vmem:[#allocation8 + $0x1e0] sm:$0xff] }
  0x49   :  { %176 = vmatprep.subr.mxu0 %v101_v21  ;;  %247 = vmatprep.subr.mxu1 %v103_v22  ;;  %v485_v35 = vld [vmem:[#allocation8 + $0x5e8] sm:$0xff]  ;;  %v484_v37 = vld [vmem:[#allocation8 + $0x5e0] sm:$0xff] }
  0x4a   :  { %177 = vmatpush1.msra.mxu0 %v100_v23  ;;  %248 = vmatpush1.msra.mxu1 %v102_v24  ;;  %v353_v38 = vld [vmem:[#allocation8 + $0x1c8] sm:$0xff]  ;;  %v352_v40 = vld [vmem:[#allocation8 + $0x1c0] sm:$0xff] }
  0x4b   :  { %178 = vmatprep.subr.mxu0 %v97_v25  ;;  %249 = vmatprep.subr.mxu1 %v99_v26  ;;  %v481_v39 = vld [vmem:[#allocation8 + $0x5c8] sm:$0xff]  ;;  %v480_v41 = vld [vmem:[#allocation8 + $0x5c0] sm:$0xff] }
  0x4c   :  { %179 = vmatpush1.msra.mxu0 %v96_v27  ;;  %250 = vmatpush1.msra.mxu1 %v98_v28  ;;  %v349_v42 = vld [vmem:[#allocation8 + $0x1a8] sm:$0xff]  ;;  %v348_v44 = vld [vmem:[#allocation8 + $0x1a0] sm:$0xff] }
  0x4d   :  { %180 = vmatprep.subr.mxu0 %v93_v29  ;;  %251 = vmatprep.subr.mxu1 %v95_v30  ;;  %v477_v43 = vld [vmem:[#allocation8 + $0x5a8] sm:$0xff]  ;;  %v476_v45 = vld [vmem:[#allocation8 + $0x5a0] sm:$0xff] }
  0x4e   :  { %181 = vmatpush1.msra.mxu0 %v92_v31  ;;  %252 = vmatpush1.msra.mxu1 %v94_v32  ;;  %v345_v46 = vld [vmem:[#allocation8 + $0x188] sm:$0xff]  ;;  %v344_v48 = vld [vmem:[#allocation8 + $0x180] sm:$0xff] }
  0x4f   :  { %1091 = vmatmul.mubr.msk.f32.vlgmr.msra.gmra.mxu0 %vm146_vm0, %v91_v33  ;;  %1092 = vmatmul.mubr.msk.f32.vlgmr.msra.gmra.mxu1 %vm146_vm0, %v91_v33  ;;  %v473_v47 = vld [vmem:[#allocation8 + $0x588] sm:$0xff]  ;;  %v472_v49 = vld [vmem:[#allocation8 + $0x580] sm:$0xff] }
  0x50   :  { %574 = vmatprep.subr.mxu0 %v357_v34  ;;  %645 = vmatprep.subr.mxu1 %v485_v35  ;;  %v341_v50 = vld [vmem:[#allocation8 + $0x168] sm:$0xff]  ;;  %v340_v52 = vld [vmem:[#allocation8 + $0x160] sm:$0xff] }
  0x51   :  { %575 = vmatpush1.msra.mxu0 %v356_v36  ;;  %646 = vmatpush1.msra.mxu1 %v484_v37  ;;  %v469_v51 = vld [vmem:[#allocation8 + $0x568] sm:$0xff]  ;;  %v468_v53 = vld [vmem:[#allocation8 + $0x560] sm:$0xff] }
  0x52   :  { %576 = vmatprep.subr.mxu0 %v353_v38  ;;  %647 = vmatprep.subr.mxu1 %v481_v39  ;;  %v337_v54 = vld [vmem:[#allocation8 + $0x148] sm:$0xff]  ;;  %v336_v56 = vld [vmem:[#allocation8 + $0x140] sm:$0xff] }
  0x53   :  { %577 = vmatpush1.msra.mxu0 %v352_v40  ;;  %648 = vmatpush1.msra.mxu1 %v480_v41  ;;  %v465_v55 = vld [vmem:[#allocation8 + $0x548] sm:$0xff]  ;;  %v464_v57 = vld [vmem:[#allocation8 + $0x540] sm:$0xff] }
  0x54   :  { %578 = vmatprep.subr.mxu0 %v349_v42  ;;  %649 = vmatprep.subr.mxu1 %v477_v43  ;;  %v333_v58 = vld [vmem:[#allocation8 + $0x128] sm:$0xff]  ;;  %v332_v60 = vld [vmem:[#allocation8 + $0x120] sm:$0xff] }
  0x55   :  { %579 = vmatpush1.msra.mxu0 %v348_v44  ;;  %650 = vmatpush1.msra.mxu1 %v476_v45  ;;  %v461_v59 = vld [vmem:[#allocation8 + $0x528] sm:$0xff]  ;;  %v460_v61 = vld [vmem:[#allocation8 + $0x520] sm:$0xff] }
  0x56   :  { %580 = vmatprep.subr.mxu0 %v345_v46  ;;  %651 = vmatprep.subr.mxu1 %v473_v47  ;;  %v329_v62 = vld [vmem:[#allocation8 + $0x108] sm:$0xff]  ;;  %v328_v0 = vld [vmem:[#allocation8 + $0x100] sm:$0xff] }
  0x57   :  { %581 = vmatpush1.msra.mxu0 %v344_v48  ;;  %652 = vmatpush1.msra.mxu1 %v472_v49  ;;  %v457_v63 = vld [vmem:[#allocation8 + $0x508] sm:$0xff]  ;;  %v456_v1 = vld [vmem:[#allocation8 + $0x500] sm:$0xff] }
  0x58   :  { %582 = vmatprep.subr.mxu0 %v341_v50  ;;  %653 = vmatprep.subr.mxu1 %v469_v51  ;;  %v325_v2 = vld [vmem:[#allocation8 + $0xe8] sm:$0xff]  ;;  %v324_v4 = vld [vmem:[#allocation8 + $0xe0] sm:$0xff] }
  0x59   :  { %583 = vmatpush1.msra.mxu0 %v340_v52  ;;  %654 = vmatpush1.msra.mxu1 %v468_v53  ;;  %v453_v3 = vld [vmem:[#allocation8 + $0x4e8] sm:$0xff]  ;;  %v452_v5 = vld [vmem:[#allocation8 + $0x4e0] sm:$0xff] }
  0x5a   :  { %584 = vmatprep.subr.mxu0 %v337_v54  ;;  %655 = vmatprep.subr.mxu1 %v465_v55  ;;  %v321_v6 = vld [vmem:[#allocation8 + $0xc8] sm:$0xff]  ;;  %v320_v8 = vld [vmem:[#allocation8 + $0xc0] sm:$0xff] }
  0x5b   :  { %585 = vmatpush1.msra.mxu0 %v336_v56  ;;  %656 = vmatpush1.msra.mxu1 %v464_v57  ;;  %v449_v7 = vld [vmem:[#allocation8 + $0x4c8] sm:$0xff]  ;;  %v448_v9 = vld [vmem:[#allocation8 + $0x4c0] sm:$0xff] }
  0x5c   :  { %586 = vmatprep.subr.mxu0 %v333_v58  ;;  %657 = vmatprep.subr.mxu1 %v461_v59  ;;  %v317_v10 = vld [vmem:[#allocation8 + $0xa8] sm:$0xff]  ;;  %v316_v12 = vld [vmem:[#allocation8 + $0xa0] sm:$0xff] }
  0x5d   :  { %587 = vmatpush1.msra.mxu0 %v332_v60  ;;  %658 = vmatpush1.msra.mxu1 %v460_v61  ;;  %v445_v11 = vld [vmem:[#allocation8 + $0x4a8] sm:$0xff]  ;;  %v444_v13 = vld [vmem:[#allocation8 + $0x4a0] sm:$0xff] }
  0x5e   :  { %588 = vmatprep.subr.mxu0 %v329_v62  ;;  %659 = vmatprep.subr.mxu1 %v457_v63  ;;  %v313_v14 = vld [vmem:[#allocation8 + $0x88] sm:$0xff]  ;;  %v312_v16 = vld [vmem:[#allocation8 + $0x80] sm:$0xff] }
  0x5f   :  { %589 = vmatpush1.msra.mxu0 %v328_v0  ;;  %660 = vmatpush1.msra.mxu1 %v456_v1  ;;  %v441_v15 = vld [vmem:[#allocation8 + $0x488] sm:$0xff]  ;;  %v440_v17 = vld [vmem:[#allocation8 + $0x480] sm:$0xff] }
  0x60   :  { %590 = vmatprep.subr.mxu0 %v325_v2  ;;  %661 = vmatprep.subr.mxu1 %v453_v3  ;;  %v309_v18 = vld [vmem:[#allocation8 + $0x68] sm:$0xff]  ;;  %v308_v20 = vld [vmem:[#allocation8 + $0x60] sm:$0xff] }
  0x61   :  { %591 = vmatpush1.msra.mxu0 %v324_v4  ;;  %662 = vmatpush1.msra.mxu1 %v452_v5  ;;  %v437_v19 = vld [vmem:[#allocation8 + $0x468] sm:$0xff]  ;;  %v436_v21 = vld [vmem:[#allocation8 + $0x460] sm:$0xff] }
  0x62   :  { %592 = vmatprep.subr.mxu0 %v321_v6  ;;  %663 = vmatprep.subr.mxu1 %v449_v7  ;;  %v305_v22 = vld [vmem:[#allocation8 + $0x48] sm:$0xff]  ;;  %v304_v24 = vld [vmem:[#allocation8 + $0x40] sm:$0xff] }
  0x63   :  { %593 = vmatpush1.msra.mxu0 %v320_v8  ;;  %664 = vmatpush1.msra.mxu1 %v448_v9  ;;  %v433_v23 = vld [vmem:[#allocation8 + $0x448] sm:$0xff]  ;;  %v432_v25 = vld [vmem:[#allocation8 + $0x440] sm:$0xff] }
  0x64   :  { %594 = vmatprep.subr.mxu0 %v317_v10  ;;  %665 = vmatprep.subr.mxu1 %v445_v11  ;;  %v301_v26 = vld [vmem:[#allocation8 + $0x28] sm:$0xff]  ;;  %v300_v28 = vld [vmem:[#allocation8 + $0x20] sm:$0xff] }
  0x65   :  { %595 = vmatpush1.msra.mxu0 %v316_v12  ;;  %666 = vmatpush1.msra.mxu1 %v444_v13  ;;  %v429_v27 = vld [vmem:[#allocation8 + $0x428] sm:$0xff]  ;;  %v428_v29 = vld [vmem:[#allocation8 + $0x420] sm:$0xff] }
  0x66   :  { %596 = vmatprep.subr.mxu0 %v313_v14  ;;  %667 = vmatprep.subr.mxu1 %v441_v15  ;;  %v297_v30 = vld [vmem:[#allocation8 + $0x8] sm:$0xff]  ;;  %v296_v32 = vld [vmem:[#allocation8] sm:$0xff] }
  0x67   :  { %597 = vmatpush1.msra.mxu0 %v312_v16  ;;  %668 = vmatpush1.msra.mxu1 %v440_v17  ;;  %v425_v31 = vld [vmem:[#allocation8 + $0x408] sm:$0xff]  ;;  %v424_v33 = vld [vmem:[#allocation8 + $0x400] sm:$0xff] }
  0x68   :  { %598 = vmatprep.subr.mxu0 %v309_v18  ;;  %669 = vmatprep.subr.mxu1 %v437_v19  ;;  %v421_v34 = vld [vmem:[#allocation8 + $0x3e8] sm:$0xff]  ;;  %v420_v36 = vld [vmem:[#allocation8 + $0x3e0] sm:$0xff] }
  0x69   :  { %599 = vmatpush1.msra.mxu0 %v308_v20  ;;  %670 = vmatpush1.msra.mxu1 %v436_v21  ;;  %v549_v35 = vld [vmem:[#allocation8 + $0x7e8] sm:$0xff]  ;;  %v548_v37 = vld [vmem:[#allocation8 + $0x7e0] sm:$0xff] }
  0x6a   :  { %600 = vmatprep.subr.mxu0 %v305_v22  ;;  %671 = vmatprep.subr.mxu1 %v433_v23  ;;  %v417_v38 = vld [vmem:[#allocation8 + $0x3c8] sm:$0xff]  ;;  %v416_v40 = vld [vmem:[#allocation8 + $0x3c0] sm:$0xff] }
  0x6b   :  { %601 = vmatpush1.msra.mxu0 %v304_v24  ;;  %672 = vmatpush1.msra.mxu1 %v432_v25  ;;  %v545_v39 = vld [vmem:[#allocation8 + $0x7c8] sm:$0xff]  ;;  %v544_v41 = vld [vmem:[#allocation8 + $0x7c0] sm:$0xff] }
  0x6c   :  { %602 = vmatprep.subr.mxu0 %v301_v26  ;;  %673 = vmatprep.subr.mxu1 %v429_v27  ;;  %v413_v42 = vld [vmem:[#allocation8 + $0x3a8] sm:$0xff]  ;;  %v412_v44 = vld [vmem:[#allocation8 + $0x3a0] sm:$0xff] }
  0x6d   :  { %603 = vmatpush1.msra.mxu0 %v300_v28  ;;  %674 = vmatpush1.msra.mxu1 %v428_v29  ;;  %v541_v43 = vld [vmem:[#allocation8 + $0x7a8] sm:$0xff]  ;;  %v540_v45 = vld [vmem:[#allocation8 + $0x7a0] sm:$0xff] }
  0x6e   :  { %604 = vmatprep.subr.mxu0 %v297_v30  ;;  %675 = vmatprep.subr.mxu1 %v425_v31  ;;  %v409_v46 = vld [vmem:[#allocation8 + $0x388] sm:$0xff]  ;;  %v408_v48 = vld [vmem:[#allocation8 + $0x380] sm:$0xff] }
  0x6f   :  { %605 = vmatpush1.msra.mxu0 %v296_v32  ;;  %676 = vmatpush1.msra.mxu1 %v424_v33  ;;  %v537_v47 = vld [vmem:[#allocation8 + $0x788] sm:$0xff]  ;;  %v536_v49 = vld [vmem:[#allocation8 + $0x780] sm:$0xff] }
  0x70   :  { %606 = vmatprep.subr.mxu0 %v421_v34  ;;  %677 = vmatprep.subr.mxu1 %v549_v35  ;;  %v405_v50 = vld [vmem:[#allocation8 + $0x368] sm:$0xff]  ;;  %v404_v52 = vld [vmem:[#allocation8 + $0x360] sm:$0xff]  ;;  %v359_v34 = vld [vmem:[#allocation8 + $0x1f8] sm:$0xff] }
  0x71   :  { %607 = vmatpush2.msra.mxu0 %v420_v36  ;;  %678 = vmatpush2.msra.mxu1 %v548_v37  ;;  %v533_v51 = vld [vmem:[#allocation8 + $0x768] sm:$0xff]  ;;  %v532_v53 = vld [vmem:[#allocation8 + $0x760] sm:$0xff]  ;;  %v487_v35 = vld [vmem:[#allocation8 + $0x5f8] sm:$0xff]  ;;  %v126_v36 = vlaneseq }
  0x72   :  { %608 = vmatprep.subr.mxu0 %v417_v38  ;;  %679 = vmatprep.subr.mxu1 %v545_v39  ;;  %v401_v54 = vld [vmem:[#allocation8 + $0x348] sm:$0xff]  ;;  %v400_v56 = vld [vmem:[#allocation8 + $0x340] sm:$0xff] }
  0x73   :  { %609 = vmatpush2.msra.mxu0 %v416_v40  ;;  %680 = vmatpush2.msra.mxu1 %v544_v41  ;;  %v529_v55 = vld [vmem:[#allocation8 + $0x748] sm:$0xff]  ;;  %v528_v57 = vld [vmem:[#allocation8 + $0x740] sm:$0xff]  ;;  %v1369_v37 = vshrl.u32 %v126_v36, 7  ;;  %v124_v40 = vld [vmem:[#allocation7] sm:$0xf] }
  0x74   :  { %610 = vmatprep.subr.mxu0 %v413_v42  ;;  %681 = vmatprep.subr.mxu1 %v541_v43  ;;  %v397_v58 = vld [vmem:[#allocation8 + $0x328] sm:$0xff]  ;;  %v396_v60 = vld [vmem:[#allocation8 + $0x320] sm:$0xff]  ;;  %v446_v36 = vld [vmem:[#allocation8 + $0x4b0] sm:$0xff] }
  0x75   :  { %611 = vmatpush2.msra.mxu0 %v412_v44  ;;  %682 = vmatpush2.msra.mxu1 %v540_v45  ;;  %v525_v59 = vld [vmem:[#allocation8 + $0x728] sm:$0xff]  ;;  %v524_v61 = vld [vmem:[#allocation8 + $0x720] sm:$0xff]  ;;  %v136_v38 = vsub.s32 2, %v1369_v37  ;;  %v128_v39 = vsub.s32 0, %v1369_v37  ;;  %v132_v41 = vsub.s32 1, %v1369_v37  ;;  %v140_v42 = vsub.s32 3, %v1369_v37 }
  0x76   :  { %612 = vmatprep.subr.mxu0 %v409_v46  ;;  %683 = vmatprep.subr.mxu1 %v537_v47  ;;  %v393_v62 = vld [vmem:[#allocation8 + $0x308] sm:$0xff]  ;;  %v392_v0 = vld [vmem:[#allocation8 + $0x300] sm:$0xff]  ;;  %v1093_v37 = vld [vmem:[%s1420_s6] ss:$0 sm:$0xff] }
  0x77   :  { %613 = vmatpush2.msra.mxu0 %v408_v48  ;;  %684 = vmatpush2.msra.mxu1 %v536_v49  ;;  %v521_v63 = vld [vmem:[#allocation8 + $0x708] sm:$0xff]  ;;  %v520_v1 = vld [vmem:[#allocation8 + $0x700] sm:$0xff]  ;;  %v137_v43 = vrot.slane %v124_v40, %v136_v38  ;;  %v129_v44 = vrot.slane %v124_v40, %v128_v39  ;;  %v133_v45 = vrot.slane %v124_v40, %v132_v41 }
  0x78   :  { %614 = vmatprep.subr.mxu0 %v405_v50  ;;  %685 = vmatprep.subr.mxu1 %v533_v51  ;;  %v389_v2 = vld [vmem:[#allocation8 + $0x2e8] sm:$0xff]  ;;  %v388_v4 = vld [vmem:[#allocation8 + $0x2e0] sm:$0xff]  ;;  %v141_v46 = vrot.slane %v124_v40, %v140_v42  ;;  %v315_v40 = vld [vmem:[#allocation8 + $0x98] sm:$0xff] }
  0x79   :  { %615 = vmatpush2.msra.mxu0 %v404_v52  ;;  %686 = vmatpush2.msra.mxu1 %v532_v53  ;;  %v517_v3 = vld [vmem:[#allocation8 + $0x6e8] sm:$0xff]  ;;  %v516_v5 = vld [vmem:[#allocation8 + $0x6e0] sm:$0xff] }
  0x7a   :  { %616 = vmatprep.subr.mxu0 %v401_v54  ;;  %687 = vmatprep.subr.mxu1 %v529_v55  ;;  %v385_v6 = vld [vmem:[#allocation8 + $0x2c8] sm:$0xff]  ;;  %v384_v8 = vld [vmem:[#allocation8 + $0x2c0] sm:$0xff] }
  0x7b   :  { %617 = vmatpush2.msra.mxu0 %v400_v56  ;;  %688 = vmatpush2.msra.mxu1 %v528_v57  ;;  %v513_v7 = vld [vmem:[#allocation8 + $0x6c8] sm:$0xff]  ;;  %v512_v9 = vld [vmem:[#allocation8 + $0x6c0] sm:$0xff] }
  0x7c   :  { %618 = vmatprep.subr.mxu0 %v397_v58  ;;  %689 = vmatprep.subr.mxu1 %v525_v59  ;;  %v381_v10 = vld [vmem:[#allocation8 + $0x2a8] sm:$0xff]  ;;  %v380_v12 = vld [vmem:[#allocation8 + $0x2a0] sm:$0xff]  ;;  %v358_v59 = vld [vmem:[#allocation8 + $0x1f0] sm:$0xff] }
  0x7d   :  { %619 = vmatpush2.msra.mxu0 %v396_v60  ;;  %690 = vmatpush2.msra.mxu1 %v524_v61  ;;  %v509_v11 = vld [vmem:[#allocation8 + $0x6a8] sm:$0xff]  ;;  %v508_v13 = vld [vmem:[#allocation8 + $0x6a0] sm:$0xff]  ;;  %v486_v60 = vld [vmem:[#allocation8 + $0x5f0] sm:$0xff] }
  0x7e   :  { %620 = vmatprep.subr.mxu0 %v393_v62  ;;  %691 = vmatprep.subr.mxu1 %v521_v63  ;;  %v377_v14 = vld [vmem:[#allocation8 + $0x288] sm:$0xff]  ;;  %v376_v16 = vld [vmem:[#allocation8 + $0x280] sm:$0xff]  ;;  %v355_v61 = vld [vmem:[#allocation8 + $0x1d8] sm:$0xff] }
  0x7f   :  { %621 = vmatpush2.msra.mxu0 %v392_v0  ;;  %692 = vmatpush2.msra.mxu1 %v520_v1  ;;  %v505_v15 = vld [vmem:[#allocation8 + $0x688] sm:$0xff]  ;;  %v504_v17 = vld [vmem:[#allocation8 + $0x680] sm:$0xff]  ;;  %v483_v62 = vld [vmem:[#allocation8 + $0x5d8] sm:$0xff] }
  0x80   :  { %622 = vmatprep.subr.mxu0 %v389_v2  ;;  %693 = vmatprep.subr.mxu1 %v517_v3  ;;  %v373_v18 = vld [vmem:[#allocation8 + $0x268] sm:$0xff]  ;;  %v372_v20 = vld [vmem:[#allocation8 + $0x260] sm:$0xff]  ;;  %v354_v63 = vld [vmem:[#allocation8 + $0x1d0] sm:$0xff] }
  0x81   :  { %623 = vmatpush2.msra.mxu0 %v388_v4  ;;  %694 = vmatpush2.msra.mxu1 %v516_v5  ;;  %v501_v19 = vld [vmem:[#allocation8 + $0x668] sm:$0xff]  ;;  %v500_v21 = vld [vmem:[#allocation8 + $0x660] sm:$0xff]  ;;  %v482_v0 = vld [vmem:[#allocation8 + $0x5d0] sm:$0xff] }
  0x82   :  { %624 = vmatprep.subr.mxu0 %v385_v6  ;;  %695 = vmatprep.subr.mxu1 %v513_v7  ;;  %v369_v22 = vld [vmem:[#allocation8 + $0x248] sm:$0xff]  ;;  %v368_v24 = vld [vmem:[#allocation8 + $0x240] sm:$0xff]  ;;  %v351_v1 = vld [vmem:[#allocation8 + $0x1b8] sm:$0xff] }
  0x83   :  { %625 = vmatpush2.msra.mxu0 %v384_v8  ;;  %696 = vmatpush2.msra.mxu1 %v512_v9  ;;  %v497_v23 = vld [vmem:[#allocation8 + $0x648] sm:$0xff]  ;;  %v496_v25 = vld [vmem:[#allocation8 + $0x640] sm:$0xff]  ;;  %v479_v2 = vld [vmem:[#allocation8 + $0x5b8] sm:$0xff] }
  0x84   :  { %626 = vmatprep.subr.mxu0 %v381_v10  ;;  %697 = vmatprep.subr.mxu1 %v509_v11  ;;  %v365_v26 = vld [vmem:[#allocation8 + $0x228] sm:$0xff]  ;;  %v364_v28 = vld [vmem:[#allocation8 + $0x220] sm:$0xff]  ;;  %v350_v3 = vld [vmem:[#allocation8 + $0x1b0] sm:$0xff] }
  0x85   :  { %627 = vmatpush2.msra.mxu0 %v380_v12  ;;  %698 = vmatpush2.msra.mxu1 %v508_v13  ;;  %v493_v27 = vld [vmem:[#allocation8 + $0x628] sm:$0xff]  ;;  %v492_v29 = vld [vmem:[#allocation8 + $0x620] sm:$0xff]  ;;  %v478_v4 = vld [vmem:[#allocation8 + $0x5b0] sm:$0xff] }
  0x86   :  { %628 = vmatprep.subr.mxu0 %v377_v14  ;;  %699 = vmatprep.subr.mxu1 %v505_v15  ;;  %v361_v30 = vld [vmem:[#allocation8 + $0x208] sm:$0xff]  ;;  %v360_v32 = vld [vmem:[#allocation8 + $0x200] sm:$0xff]  ;;  %v347_v5 = vld [vmem:[#allocation8 + $0x198] sm:$0xff] }
  0x87   :  { %629 = vmatpush2.msra.mxu0 %v376_v16  ;;  %700 = vmatpush2.msra.mxu1 %v504_v17  ;;  %v489_v31 = vld [vmem:[#allocation8 + $0x608] sm:$0xff]  ;;  %v488_v33 = vld [vmem:[#allocation8 + $0x600] sm:$0xff]  ;;  %v475_v6 = vld [vmem:[#allocation8 + $0x598] sm:$0xff] }
  0x88   :  { %630 = vmatprep.subr.mxu0 %v373_v18  ;;  %701 = vmatprep.subr.mxu1 %v501_v19  ;;  %v346_v7 = vld [vmem:[#allocation8 + $0x190] sm:$0xff]  ;;  %v343_v9 = vld [vmem:[#allocation8 + $0x178] sm:$0xff] }
  0x89   :  { %631 = vmatpush2.msra.mxu0 %v372_v20  ;;  %702 = vmatpush2.msra.mxu1 %v500_v21  ;;  %v474_v8 = vld [vmem:[#allocation8 + $0x590] sm:$0xff]  ;;  %v471_v10 = vld [vmem:[#allocation8 + $0x578] sm:$0xff] }
  0x8a   :  { %632 = vmatprep.subr.mxu0 %v369_v22  ;;  %703 = vmatprep.subr.mxu1 %v497_v23  ;;  %v342_v11 = vld [vmem:[#allocation8 + $0x170] sm:$0xff]  ;;  %v339_v13 = vld [vmem:[#allocation8 + $0x158] sm:$0xff] }
  0x8b   :  { %633 = vmatpush2.msra.mxu0 %v368_v24  ;;  %704 = vmatpush2.msra.mxu1 %v496_v25  ;;  %v470_v12 = vld [vmem:[#allocation8 + $0x570] sm:$0xff]  ;;  %v467_v14 = vld [vmem:[#allocation8 + $0x558] sm:$0xff] }
  0x8c   :  { %634 = vmatprep.subr.mxu0 %v365_v26  ;;  %705 = vmatprep.subr.mxu1 %v493_v27  ;;  %v338_v15 = vld [vmem:[#allocation8 + $0x150] sm:$0xff]  ;;  %v335_v17 = vld [vmem:[#allocation8 + $0x138] sm:$0xff] }
  0x8d   :  { %635 = vmatpush2.msra.mxu0 %v364_v28  ;;  %706 = vmatpush2.msra.mxu1 %v492_v29  ;;  %v466_v16 = vld [vmem:[#allocation8 + $0x550] sm:$0xff]  ;;  %v463_v18 = vld [vmem:[#allocation8 + $0x538] sm:$0xff] }
  0x8e   :  { %636 = vmatprep.subr.mxu0 %v361_v30  ;;  %707 = vmatprep.subr.mxu1 %v489_v31  ;;  %v334_v19 = vld [vmem:[#allocation8 + $0x130] sm:$0xff]  ;;  %v331_v21 = vld [vmem:[#allocation8 + $0x118] sm:$0xff] }
  0x8f   :  { %637 = vmatpush2.msra.mxu0 %v360_v32  ;;  %708 = vmatpush2.msra.mxu1 %v488_v33  ;;  %v462_v20 = vld [vmem:[#allocation8 + $0x530] sm:$0xff]  ;;  %v459_v22 = vld [vmem:[#allocation8 + $0x518] sm:$0xff] }
  0x90   :  { %716 = vmatprep.subr.mxu0 %v359_v34  ;;  %787 = vmatprep.subr.mxu1 %v487_v35  ;;  %v330_v23 = vld [vmem:[#allocation8 + $0x110] sm:$0xff]  ;;  %v327_v25 = vld [vmem:[#allocation8 + $0xf8] sm:$0xff] }
  0x91   :  { %v458_v24 = vld [vmem:[#allocation8 + $0x510] sm:$0xff]  ;;  %v455_v26 = vld [vmem:[#allocation8 + $0x4f8] sm:$0xff] }
  0x92   :  { %v326_v27 = vld [vmem:[#allocation8 + $0xf0] sm:$0xff]  ;;  %v323_v29 = vld [vmem:[#allocation8 + $0xd8] sm:$0xff] }
  0x93   :  { %v454_v28 = vld [vmem:[#allocation8 + $0x4f0] sm:$0xff]  ;;  %v451_v30 = vld [vmem:[#allocation8 + $0x4d8] sm:$0xff] }
  0x94   :  { %v322_v31 = vld [vmem:[#allocation8 + $0xd0] sm:$0xff]  ;;  %v319_v33 = vld [vmem:[#allocation8 + $0xb8] sm:$0xff] }
  0x95   :  { %v450_v32 = vld [vmem:[#allocation8 + $0x4d0] sm:$0xff]  ;;  %v447_v34 = vld [vmem:[#allocation8 + $0x4b8] sm:$0xff] }
  0x96   :  { %v318_v35 = vld [vmem:[#allocation8 + $0xb0] sm:$0xff] }
 0x10f   :  { %v216_v47 = vpop.f32.mrf.mxu0  ;;  %v287_v48 = vpop.f32.mrf.mxu1 }
 0x110   :  { %v1383_v49 = vadd.f32 %v287_v48, %v137_v43  ;;  %v1385_v50 = vadd.f32 %v216_v47, %v129_v44  ;;  %v443_v43 = vld [vmem:[#allocation8 + $0x498] sm:$0xff]  ;;  %v314_v44 = vld [vmem:[#allocation8 + $0x90] sm:$0xff] }
 0x111   :  { %v218_v51 = vpop.f32.mrf.mxu0  ;;  %v289_v52 = vpop.f32.mrf.mxu1  ;;  %v439_v47 = vld [vmem:[#allocation8 + $0x478] sm:$0xff]  ;;  %v310_v48 = vld [vmem:[#allocation8 + $0x70] sm:$0xff] }
 0x112   :  { %v219_v53 = vadd.f32 %v218_v51, %v133_v45  ;;  %v290_v54 = vadd.f32 %v289_v52, %v141_v46  ;;  %v294_v55 = vmax.f32 %v1383_v49, 0.0  ;;  %v292_v58 = vmax.f32 %v1385_v50, 0.0  ;;  %v442_v45 = vld [vmem:[#allocation8 + $0x490] sm:$0xff]  ;;  %v311_v46 = vld [vmem:[#allocation8 + $0x78] sm:$0xff] }
 0x113   :  { %v438_v51 = vld [vmem:[#allocation8 + $0x470] sm:$0xff]  ;;  %v307_v52 = vld [vmem:[#allocation8 + $0x58] sm:$0xff] }
 0x114   :  { %v293_v56 = vmax.f32 %v219_v53, 0.0  ;;  %v295_v57 = vmax.f32 %v290_v54, 0.0  ;;  %v435_v53 = vld [vmem:[#allocation8 + $0x458] sm:$0xff]  ;;  %v306_v54 = vld [vmem:[#allocation8 + $0x50] sm:$0xff] }
 0x115   :  { %v888_v50 = vld [vmem:[#allocation10 + $0xd0] sm:$0xff]  ;;  %v925_v49 = vld [vmem:[#allocation10 + $0x1f8] sm:$0xff] }
 0x116   :  { %638 = vmatprep.mubr.f32.mxu0 %v293_v56  ;;  %709 = vmatprep.mubr.f32.mxu1 %v295_v57 }
 0x117   :  { %639 = vmatmul.mubr.f32.vlgmr.msra.gmra.mxu0 %v292_v58  ;;  %710 = vmatmul.mubr.f32.vlgmr.msra.gmra.mxu1 %v294_v55 }
 0x118   :  { %717 = vmatpush1.msra.mxu0 %v358_v59  ;;  %788 = vmatpush1.msra.mxu1 %v486_v60  ;;  %v431_v59 = vld [vmem:[#allocation8 + $0x438] sm:$0xff]  ;;  %v302_v60 = vld [vmem:[#allocation8 + $0x30] sm:$0xff] }
 0x119   :  { %718 = vmatprep.subr.mxu0 %v355_v61  ;;  %780 = vmatprep.mubr.f32.mxu0 %v293_v56  ;;  %v434_v56 = vld [vmem:[#allocation8 + $0x450] sm:$0xff] }
 0x11a   :  { %789 = vmatprep.subr.mxu1 %v483_v62  ;;  %851 = vmatprep.mubr.f32.mxu1 %v295_v57  ;;  %v303_v57 = vld [vmem:[#allocation8 + $0x38] sm:$0xff]  ;;  %v430_v61 = vld [vmem:[#allocation8 + $0x430] sm:$0xff] }
 0x11b   :  { %719 = vmatpush1.msra.mxu0 %v354_v63  ;;  %790 = vmatpush1.msra.mxu1 %v482_v0  ;;  %v299_v62 = vld [vmem:[#allocation8 + $0x18] sm:$0xff]  ;;  %v298_v0 = vld [vmem:[#allocation8 + $0x10] sm:$0xff] }
 0x11c   :  { %720 = vmatprep.subr.mxu0 %v351_v1  ;;  %791 = vmatprep.subr.mxu1 %v479_v2  ;;  %v427_v63 = vld [vmem:[#allocation8 + $0x418] sm:$0xff]  ;;  %v426_v1 = vld [vmem:[#allocation8 + $0x410] sm:$0xff] }
 0x11d   :  { %721 = vmatpush1.msra.mxu0 %v350_v3  ;;  %792 = vmatpush1.msra.mxu1 %v478_v4  ;;  %v423_v2 = vld [vmem:[#allocation8 + $0x3f8] sm:$0xff]  ;;  %v422_v4 = vld [vmem:[#allocation8 + $0x3f0] sm:$0xff] }
 0x11e   :  { %722 = vmatprep.subr.mxu0 %v347_v5  ;;  %793 = vmatprep.subr.mxu1 %v475_v6  ;;  %v551_v3 = vld [vmem:[#allocation8 + $0x7f8] sm:$0xff]  ;;  %v550_v5 = vld [vmem:[#allocation8 + $0x7f0] sm:$0xff] }
 0x11f   :  { %723 = vmatpush1.msra.mxu0 %v346_v7  ;;  %794 = vmatpush1.msra.mxu1 %v474_v8  ;;  %v419_v6 = vld [vmem:[#allocation8 + $0x3d8] sm:$0xff]  ;;  %v418_v8 = vld [vmem:[#allocation8 + $0x3d0] sm:$0xff] }
 0x120   :  { %724 = vmatprep.subr.mxu0 %v343_v9  ;;  %795 = vmatprep.subr.mxu1 %v471_v10  ;;  %v547_v7 = vld [vmem:[#allocation8 + $0x7d8] sm:$0xff]  ;;  %v546_v9 = vld [vmem:[#allocation8 + $0x7d0] sm:$0xff] }
 0x121   :  { %725 = vmatpush1.msra.mxu0 %v342_v11  ;;  %796 = vmatpush1.msra.mxu1 %v470_v12  ;;  %v415_v10 = vld [vmem:[#allocation8 + $0x3b8] sm:$0xff]  ;;  %v414_v12 = vld [vmem:[#allocation8 + $0x3b0] sm:$0xff] }
 0x122   :  { %726 = vmatprep.subr.mxu0 %v339_v13  ;;  %797 = vmatprep.subr.mxu1 %v467_v14  ;;  %v543_v11 = vld [vmem:[#allocation8 + $0x7b8] sm:$0xff]  ;;  %v542_v13 = vld [vmem:[#allocation8 + $0x7b0] sm:$0xff] }
 0x123   :  { %727 = vmatpush1.msra.mxu0 %v338_v15  ;;  %798 = vmatpush1.msra.mxu1 %v466_v16  ;;  %v411_v14 = vld [vmem:[#allocation8 + $0x398] sm:$0xff]  ;;  %v410_v16 = vld [vmem:[#allocation8 + $0x390] sm:$0xff] }
 0x124   :  { %728 = vmatprep.subr.mxu0 %v335_v17  ;;  %799 = vmatprep.subr.mxu1 %v463_v18  ;;  %v539_v15 = vld [vmem:[#allocation8 + $0x798] sm:$0xff]  ;;  %v538_v17 = vld [vmem:[#allocation8 + $0x790] sm:$0xff] }
 0x125   :  { %729 = vmatpush1.msra.mxu0 %v334_v19  ;;  %800 = vmatpush1.msra.mxu1 %v462_v20  ;;  %v407_v18 = vld [vmem:[#allocation8 + $0x378] sm:$0xff]  ;;  %v406_v20 = vld [vmem:[#allocation8 + $0x370] sm:$0xff] }
 0x126   :  { %730 = vmatprep.subr.mxu0 %v331_v21  ;;  %801 = vmatprep.subr.mxu1 %v459_v22  ;;  %v535_v19 = vld [vmem:[#allocation8 + $0x778] sm:$0xff]  ;;  %v534_v21 = vld [vmem:[#allocation8 + $0x770] sm:$0xff] }
 0x127   :  { %731 = vmatpush1.msra.mxu0 %v330_v23  ;;  %802 = vmatpush1.msra.mxu1 %v458_v24  ;;  %v403_v22 = vld [vmem:[#allocation8 + $0x358] sm:$0xff]  ;;  %v402_v24 = vld [vmem:[#allocation8 + $0x350] sm:$0xff] }
 0x128   :  { %732 = vmatprep.subr.mxu0 %v327_v25  ;;  %803 = vmatprep.subr.mxu1 %v455_v26  ;;  %v531_v23 = vld [vmem:[#allocation8 + $0x758] sm:$0xff]  ;;  %v530_v25 = vld [vmem:[#allocation8 + $0x750] sm:$0xff] }
 0x129   :  { %733 = vmatpush1.msra.mxu0 %v326_v27  ;;  %804 = vmatpush1.msra.mxu1 %v454_v28  ;;  %v399_v26 = vld [vmem:[#allocation8 + $0x338] sm:$0xff]  ;;  %v398_v28 = vld [vmem:[#allocation8 + $0x330] sm:$0xff] }
 0x12a   :  { %734 = vmatprep.subr.mxu0 %v323_v29  ;;  %805 = vmatprep.subr.mxu1 %v451_v30  ;;  %v527_v27 = vld [vmem:[#allocation8 + $0x738] sm:$0xff]  ;;  %v526_v29 = vld [vmem:[#allocation8 + $0x730] sm:$0xff] }
 0x12b   :  { %735 = vmatpush1.msra.mxu0 %v322_v31  ;;  %806 = vmatpush1.msra.mxu1 %v450_v32  ;;  %v395_v30 = vld [vmem:[#allocation8 + $0x318] sm:$0xff]  ;;  %v394_v32 = vld [vmem:[#allocation8 + $0x310] sm:$0xff] }
 0x12c   :  { %736 = vmatprep.subr.mxu0 %v319_v33  ;;  %807 = vmatprep.subr.mxu1 %v447_v34  ;;  %v523_v31 = vld [vmem:[#allocation8 + $0x718] sm:$0xff]  ;;  %v522_v33 = vld [vmem:[#allocation8 + $0x710] sm:$0xff] }
 0x12d   :  { %737 = vmatpush1.msra.mxu0 %v318_v35  ;;  %808 = vmatpush1.msra.mxu1 %v446_v36  ;;  %v391_v34 = vld [vmem:[#allocation8 + $0x2f8] sm:$0xff]  ;;  %v390_v36 = vld [vmem:[#allocation8 + $0x2f0] sm:$0xff] }
 0x12e   :  { %738 = vmatprep.subr.mxu0 %v315_v40  ;;  %809 = vmatprep.subr.mxu1 %v443_v43  ;;  %v519_v35 = vld [vmem:[#allocation8 + $0x6f8] sm:$0xff]  ;;  %v518_v40 = vld [vmem:[#allocation8 + $0x6f0] sm:$0xff] }
 0x12f   :  { %739 = vmatpush1.msra.mxu0 %v314_v44  ;;  %810 = vmatpush1.msra.mxu1 %v442_v45  ;;  %v387_v43 = vld [vmem:[#allocation8 + $0x2d8] sm:$0xff]  ;;  %v386_v45 = vld [vmem:[#allocation8 + $0x2d0] sm:$0xff] }
 0x130   :  { %740 = vmatprep.subr.mxu0 %v311_v46  ;;  %811 = vmatprep.subr.mxu1 %v439_v47  ;;  %v515_v44 = vld [vmem:[#allocation8 + $0x6d8] sm:$0xff]  ;;  %v514_v46 = vld [vmem:[#allocation8 + $0x6d0] sm:$0xff] }
 0x131   :  { %741 = vmatpush1.msra.mxu0 %v310_v48  ;;  %812 = vmatpush1.msra.mxu1 %v438_v51  ;;  %v383_v47 = vld [vmem:[#allocation8 + $0x2b8] sm:$0xff]  ;;  %v382_v51 = vld [vmem:[#allocation8 + $0x2b0] sm:$0xff] }
 0x132   :  { %742 = vmatprep.subr.mxu0 %v307_v52  ;;  %813 = vmatprep.subr.mxu1 %v435_v53  ;;  %v511_v48 = vld [vmem:[#allocation8 + $0x6b8] sm:$0xff]  ;;  %v510_v52 = vld [vmem:[#allocation8 + $0x6b0] sm:$0xff] }
 0x133   :  { %743 = vmatpush1.msra.mxu0 %v306_v54  ;;  %814 = vmatpush1.msra.mxu1 %v434_v56  ;;  %v379_v53 = vld [vmem:[#allocation8 + $0x298] sm:$0xff]  ;;  %v378_v56 = vld [vmem:[#allocation8 + $0x290] sm:$0xff] }
 0x134   :  { %744 = vmatprep.subr.mxu0 %v303_v57  ;;  %815 = vmatprep.subr.mxu1 %v431_v59  ;;  %v507_v54 = vld [vmem:[#allocation8 + $0x698] sm:$0xff]  ;;  %v506_v57 = vld [vmem:[#allocation8 + $0x690] sm:$0xff] }
 0x135   :  { %745 = vmatpush1.msra.mxu0 %v302_v60  ;;  %816 = vmatpush1.msra.mxu1 %v430_v61  ;;  %v375_v59 = vld [vmem:[#allocation8 + $0x278] sm:$0xff]  ;;  %v374_v61 = vld [vmem:[#allocation8 + $0x270] sm:$0xff] }
 0x136   :  { %746 = vmatprep.subr.mxu0 %v299_v62  ;;  %817 = vmatprep.subr.mxu1 %v427_v63  ;;  %v503_v60 = vld [vmem:[#allocation8 + $0x678] sm:$0xff]  ;;  %v502_v62 = vld [vmem:[#allocation8 + $0x670] sm:$0xff] }
 0x137   :  { %747 = vmatpush1.msra.mxu0 %v298_v0  ;;  %818 = vmatpush1.msra.mxu1 %v426_v1  ;;  %v371_v63 = vld [vmem:[#allocation8 + $0x258] sm:$0xff]  ;;  %v370_v1 = vld [vmem:[#allocation8 + $0x250] sm:$0xff] }
 0x138   :  { %748 = vmatprep.subr.mxu0 %v423_v2  ;;  %819 = vmatprep.subr.mxu1 %v551_v3  ;;  %v499_v0 = vld [vmem:[#allocation8 + $0x658] sm:$0xff]  ;;  %v498_v2 = vld [vmem:[#allocation8 + $0x650] sm:$0xff] }
 0x139   :  { %749 = vmatpush2.msra.mxu0 %v422_v4  ;;  %820 = vmatpush2.msra.mxu1 %v550_v5  ;;  %v367_v3 = vld [vmem:[#allocation8 + $0x238] sm:$0xff]  ;;  %v366_v5 = vld [vmem:[#allocation8 + $0x230] sm:$0xff] }
 0x13a   :  { %750 = vmatprep.subr.mxu0 %v419_v6  ;;  %821 = vmatprep.subr.mxu1 %v547_v7  ;;  %v495_v4 = vld [vmem:[#allocation8 + $0x638] sm:$0xff]  ;;  %v494_v6 = vld [vmem:[#allocation8 + $0x630] sm:$0xff] }
 0x13b   :  { %751 = vmatpush2.msra.mxu0 %v418_v8  ;;  %822 = vmatpush2.msra.mxu1 %v546_v9  ;;  %v363_v7 = vld [vmem:[#allocation8 + $0x218] sm:$0xff]  ;;  %v362_v9 = vld [vmem:[#allocation8 + $0x210] sm:$0xff] }
 0x13c   :  { %752 = vmatprep.subr.mxu0 %v415_v10  ;;  %823 = vmatprep.subr.mxu1 %v543_v11  ;;  %v491_v8 = vld [vmem:[#allocation8 + $0x618] sm:$0xff]  ;;  %v490_v10 = vld [vmem:[#allocation8 + $0x610] sm:$0xff] }
 0x13d   :  { %753 = vmatpush2.msra.mxu0 %v414_v12  ;;  %824 = vmatpush2.msra.mxu1 %v542_v13  ;;  %v893_v11 = vld [vmem:[#allocation10 + $0xf8] sm:$0xff]  ;;  %v892_v13 = vld [vmem:[#allocation10 + $0xf0] sm:$0xff] }
 0x13e   :  { %754 = vmatprep.subr.mxu0 %v411_v14  ;;  %825 = vmatprep.subr.mxu1 %v539_v15  ;;  %v877_v12 = vld [vmem:[#allocation10 + $0x78] sm:$0xff]  ;;  %v876_v14 = vld [vmem:[#allocation10 + $0x70] sm:$0xff]  ;;  %v891_v15 = vld [vmem:[#allocation10 + $0xe8] sm:$0xff] }
 0x13f   :  { %755 = vmatpush2.msra.mxu0 %v410_v16  ;;  %826 = vmatpush2.msra.mxu1 %v538_v17  ;;  %v875_v16 = vld [vmem:[#allocation10 + $0x68] sm:$0xff]  ;;  %v890_v17 = vld [vmem:[#allocation10 + $0xe0] sm:$0xff] }
 0x140   :  { %756 = vmatprep.subr.mxu0 %v407_v18  ;;  %827 = vmatprep.subr.mxu1 %v535_v19  ;;  %v874_v18 = vld [vmem:[#allocation10 + $0x60] sm:$0xff]  ;;  %v889_v19 = vld [vmem:[#allocation10 + $0xd8] sm:$0xff] }
 0x141   :  { %757 = vmatpush2.msra.mxu0 %v406_v20  ;;  %828 = vmatpush2.msra.mxu1 %v534_v21  ;;  %v873_v20 = vld [vmem:[#allocation10 + $0x58] sm:$0xff]  ;;  %v924_v21 = vld [vmem:[#allocation10 + $0x1f0] sm:$0xff] }
 0x142   :  { %758 = vmatprep.subr.mxu0 %v403_v22  ;;  %829 = vmatprep.subr.mxu1 %v531_v23  ;;  %v887_v22 = vld [vmem:[#allocation10 + $0xc8] sm:$0xff]  ;;  %v908_v23 = vld [vmem:[#allocation10 + $0x170] sm:$0xff] }
 0x143   :  { %759 = vmatpush2.msra.mxu0 %v402_v24  ;;  %830 = vmatpush2.msra.mxu1 %v530_v25  ;;  %v871_v24 = vld [vmem:[#allocation10 + $0x48] sm:$0xff] }
 0x144   :  { %760 = vmatprep.subr.mxu0 %v399_v26  ;;  %831 = vmatprep.subr.mxu1 %v527_v27  ;;  %v923_v25 = vld [vmem:[#allocation10 + $0x1e8] sm:$0xff]  ;;  %v886_v26 = vld [vmem:[#allocation10 + $0xc0] sm:$0xff] }
 0x145   :  { %761 = vmatpush2.msra.mxu0 %v398_v28  ;;  %832 = vmatpush2.msra.mxu1 %v526_v29  ;;  %v907_v27 = vld [vmem:[#allocation10 + $0x168] sm:$0xff]  ;;  %v870_v28 = vld [vmem:[#allocation10 + $0x40] sm:$0xff] }
 0x146   :  { %762 = vmatprep.subr.mxu0 %v395_v30  ;;  %833 = vmatprep.subr.mxu1 %v523_v31  ;;  %v922_v29 = vld [vmem:[#allocation10 + $0x1e0] sm:$0xff]  ;;  %v885_v30 = vld [vmem:[#allocation10 + $0xb8] sm:$0xff] }
 0x147   :  { %763 = vmatpush2.msra.mxu0 %v394_v32  ;;  %834 = vmatpush2.msra.mxu1 %v522_v33  ;;  %v906_v31 = vld [vmem:[#allocation10 + $0x160] sm:$0xff]  ;;  %v869_v32 = vld [vmem:[#allocation10 + $0x38] sm:$0xff] }
 0x148   :  { %764 = vmatprep.subr.mxu0 %v391_v34  ;;  %835 = vmatprep.subr.mxu1 %v519_v35  ;;  %v921_v33 = vld [vmem:[#allocation10 + $0x1d8] sm:$0xff]  ;;  %v884_v34 = vld [vmem:[#allocation10 + $0xb0] sm:$0xff] }
 0x149   :  { %765 = vmatpush2.msra.mxu0 %v390_v36  ;;  %836 = vmatpush2.msra.mxu1 %v518_v40  ;;  %v905_v35 = vld [vmem:[#allocation10 + $0x158] sm:$0xff]  ;;  %v868_v36 = vld [vmem:[#allocation10 + $0x30] sm:$0xff] }
 0x14a   :  { %766 = vmatprep.subr.mxu0 %v387_v43  ;;  %837 = vmatprep.subr.mxu1 %v515_v44  ;;  %v920_v40 = vld [vmem:[#allocation10 + $0x1d0] sm:$0xff]  ;;  %v883_v43 = vld [vmem:[#allocation10 + $0xa8] sm:$0xff] }
 0x14b   :  { %767 = vmatpush2.msra.mxu0 %v386_v45  ;;  %838 = vmatpush2.msra.mxu1 %v514_v46  ;;  %v904_v44 = vld [vmem:[#allocation10 + $0x150] sm:$0xff]  ;;  %v867_v45 = vld [vmem:[#allocation10 + $0x28] sm:$0xff] }
 0x14c   :  { %768 = vmatprep.subr.mxu0 %v383_v47  ;;  %839 = vmatprep.subr.mxu1 %v511_v48  ;;  %v919_v46 = vld [vmem:[#allocation10 + $0x1c8] sm:$0xff]  ;;  %v882_v47 = vld [vmem:[#allocation10 + $0xa0] sm:$0xff] }
 0x14d   :  { %769 = vmatpush2.msra.mxu0 %v382_v51  ;;  %840 = vmatpush2.msra.mxu1 %v510_v52  ;;  %v903_v48 = vld [vmem:[#allocation10 + $0x148] sm:$0xff]  ;;  %v866_v51 = vld [vmem:[#allocation10 + $0x20] sm:$0xff] }
 0x14e   :  { %770 = vmatprep.subr.mxu0 %v379_v53  ;;  %841 = vmatprep.subr.mxu1 %v507_v54  ;;  %v918_v52 = vld [vmem:[#allocation10 + $0x1c0] sm:$0xff]  ;;  %v881_v53 = vld [vmem:[#allocation10 + $0x98] sm:$0xff] }
 0x14f   :  { %771 = vmatpush2.msra.mxu0 %v378_v56  ;;  %842 = vmatpush2.msra.mxu1 %v506_v57  ;;  %v902_v54 = vld [vmem:[#allocation10 + $0x140] sm:$0xff]  ;;  %v865_v56 = vld [vmem:[#allocation10 + $0x18] sm:$0xff] }
 0x150   :  { %772 = vmatprep.subr.mxu0 %v375_v59  ;;  %843 = vmatprep.subr.mxu1 %v503_v60  ;;  %v917_v57 = vld [vmem:[#allocation10 + $0x1b8] sm:$0xff]  ;;  %v880_v59 = vld [vmem:[#allocation10 + $0x90] sm:$0xff] }
 0x151   :  { %773 = vmatpush2.msra.mxu0 %v374_v61  ;;  %844 = vmatpush2.msra.mxu1 %v502_v62  ;;  %v901_v60 = vld [vmem:[#allocation10 + $0x138] sm:$0xff]  ;;  %v864_v61 = vld [vmem:[#allocation10 + $0x10] sm:$0xff] }
 0x152   :  { %774 = vmatprep.subr.mxu0 %v371_v63  ;;  %845 = vmatprep.subr.mxu1 %v499_v0  ;;  %v916_v62 = vld [vmem:[#allocation10 + $0x1b0] sm:$0xff]  ;;  %v879_v63 = vld [vmem:[#allocation10 + $0x88] sm:$0xff] }
 0x153   :  { %775 = vmatpush2.msra.mxu0 %v370_v1  ;;  %846 = vmatpush2.msra.mxu1 %v498_v2  ;;  %v900_v0 = vld [vmem:[#allocation10 + $0x130] sm:$0xff]  ;;  %v863_v1 = vld [vmem:[#allocation10 + $0x8] sm:$0xff] }
 0x154   :  { %776 = vmatprep.subr.mxu0 %v367_v3  ;;  %847 = vmatprep.subr.mxu1 %v495_v4  ;;  %v915_v2 = vld [vmem:[#allocation10 + $0x1a8] sm:$0xff]  ;;  %v878_v3 = vld [vmem:[#allocation10 + $0x80] sm:$0xff] }
 0x155   :  { %777 = vmatpush2.msra.mxu0 %v366_v5  ;;  %848 = vmatpush2.msra.mxu1 %v494_v6  ;;  %v899_v4 = vld [vmem:[#allocation10 + $0x128] sm:$0xff]  ;;  %v862_v5 = vld [vmem:[#allocation10] sm:$0xff] }
 0x156   :  { %778 = vmatprep.subr.mxu0 %v363_v7  ;;  %849 = vmatprep.subr.mxu1 %v491_v8  ;;  %v914_v6 = vld [vmem:[#allocation10 + $0x1a0] sm:$0xff]  ;;  %v913_v8 = vld [vmem:[#allocation10 + $0x198] sm:$0xff] }
 0x157   :  { %779 = vmatpush2.msra.mxu0 %v362_v9  ;;  %850 = vmatpush2.msra.mxu1 %v490_v10  ;;  %v898_v7 = vld [vmem:[#allocation10 + $0x120] sm:$0xff]  ;;  %v897_v9 = vld [vmem:[#allocation10 + $0x118] sm:$0xff]  ;;  %v912_v10 = vld [vmem:[#allocation10 + $0x190] sm:$0xff] }
 0x158   :  { %781 = vmatmul.mubr.f32.vlgmr.msra.gmra.mxu0 %v292_v58  ;;  %852 = vmatmul.mubr.f32.vlgmr.msra.gmra.mxu1 %v294_v55  ;;  %v872_v58 = vld [vmem:[#allocation10 + $0x50] sm:$0xff]  ;;  %v909_v55 = vld [vmem:[#allocation10 + $0x178] sm:$0xff] }
 0x159   :  { %1094 = vmatprep.subr.mxu0 %v893_v11  ;;  %1129 = vmatprep.subr.mxu1 %v925_v49  ;;  %v896_v11 = vld [vmem:[#allocation10 + $0x110] sm:$0xff] }
 0x15a   :  { %1095 = vmatpush3.msra.mxu0 %v877_v12  ;;  %1130 = vmatpush3.msra.mxu1 %v909_v55  ;;  %v911_v12 = vld [vmem:[#allocation10 + $0x188] sm:$0xff] }
 0x15b   :  { %1096 = vmatprep.subr.mxu0 %v892_v13  ;;  %1131 = vmatprep.subr.mxu1 %v924_v21  ;;  %v895_v13 = vld [vmem:[#allocation10 + $0x108] sm:$0xff] }
 0x15c   :  { %1097 = vmatpush3.msra.mxu0 %v876_v14  ;;  %1132 = vmatpush3.msra.mxu1 %v908_v23  ;;  %v910_v14 = vld [vmem:[#allocation10 + $0x180] sm:$0xff] }
 0x15d   :  { %1098 = vmatprep.subr.mxu0 %v891_v15  ;;  %1133 = vmatprep.subr.mxu1 %v923_v25  ;;  %v894_v15 = vld [vmem:[#allocation10 + $0x100] sm:$0xff] }
 0x15e   :  { %1099 = vmatpush3.msra.mxu0 %v875_v16  ;;  %1134 = vmatpush3.msra.mxu1 %v907_v27  ;;  %v552_v16 = vld [vmem:[%s1418_s4] sm:$0xf] }
 0x15f   :  { %1100 = vmatprep.subr.mxu0 %v890_v17  ;;  %1135 = vmatprep.subr.mxu1 %v922_v29  ;;  %v557_v17 = vrot.slane %v552_v16, %v128_v39  ;;  %v565_v25 = vrot.slane %v552_v16, %v136_v38  ;;  %v569_v39 = vrot.slane %v552_v16, %v140_v42 }
 0x160   :  { %1101 = vmatpush3.msra.mxu0 %v874_v18  ;;  %1136 = vmatpush3.msra.mxu1 %v906_v31  ;;  %v561_v18 = vrot.slane %v552_v16, %v132_v41 }
 0x161   :  { %1102 = vmatprep.subr.mxu0 %v889_v19  ;;  %1137 = vmatprep.subr.mxu1 %v921_v33 }
 0x162   :  { %1103 = vmatpush3.msra.mxu0 %v873_v20  ;;  %1138 = vmatpush3.msra.mxu1 %v905_v35 }
 0x163   :  { %1104 = vmatprep.subr.mxu0 %v888_v50  ;;  %1139 = vmatprep.subr.mxu1 %v920_v40 }
 0x164   :  { %1105 = vmatpush3.msra.mxu0 %v872_v58  ;;  %1140 = vmatpush3.msra.mxu1 %v904_v44 }
 0x165   :  { %1106 = vmatprep.subr.mxu0 %v887_v22  ;;  %1141 = vmatprep.subr.mxu1 %v919_v46 }
 0x166   :  { %1107 = vmatpush3.msra.mxu0 %v871_v24  ;;  %1142 = vmatpush3.msra.mxu1 %v903_v48 }
 0x167   :  { %1108 = vmatprep.subr.mxu0 %v886_v26  ;;  %1143 = vmatprep.subr.mxu1 %v918_v52 }
 0x168   :  { %1109 = vmatpush3.msra.mxu0 %v870_v28  ;;  %1144 = vmatpush3.msra.mxu1 %v902_v54 }
 0x169   :  { %1110 = vmatprep.subr.mxu0 %v885_v30  ;;  %1145 = vmatprep.subr.mxu1 %v917_v57 }
 0x16a   :  { %1111 = vmatpush3.msra.mxu0 %v869_v32  ;;  %1146 = vmatpush3.msra.mxu1 %v901_v60 }
 0x16b   :  { %1112 = vmatprep.subr.mxu0 %v884_v34  ;;  %1147 = vmatprep.subr.mxu1 %v916_v62 }
 0x16c   :  { %1113 = vmatpush3.msra.mxu0 %v868_v36  ;;  %1148 = vmatpush3.msra.mxu1 %v900_v0 }
 0x16d   :  { %1114 = vmatprep.subr.mxu0 %v883_v43  ;;  %1149 = vmatprep.subr.mxu1 %v915_v2 }
 0x16e   :  { %1115 = vmatpush3.msra.mxu0 %v867_v45  ;;  %1150 = vmatpush3.msra.mxu1 %v899_v4 }
 0x16f   :  { %1116 = vmatprep.subr.mxu0 %v882_v47  ;;  %1151 = vmatprep.subr.mxu1 %v914_v6 }
 0x170   :  { %1117 = vmatpush3.msra.mxu0 %v866_v51  ;;  %1152 = vmatpush3.msra.mxu1 %v898_v7 }
 0x171   :  { %1118 = vmatprep.subr.mxu0 %v881_v53  ;;  %1153 = vmatprep.subr.mxu1 %v913_v8 }
 0x172   :  { %1119 = vmatpush3.msra.mxu0 %v865_v56  ;;  %1154 = vmatpush3.msra.mxu1 %v897_v9 }
 0x173   :  { %1120 = vmatprep.subr.mxu0 %v880_v59  ;;  %1155 = vmatprep.subr.mxu1 %v912_v10 }
 0x174   :  { %1121 = vmatpush3.msra.mxu0 %v864_v61  ;;  %1156 = vmatpush3.msra.mxu1 %v896_v11 }
 0x175   :  { %1122 = vmatprep.subr.mxu0 %v879_v63  ;;  %1157 = vmatprep.subr.mxu1 %v911_v12 }
 0x176   :  { %1123 = vmatpush3.msra.mxu0 %v863_v1  ;;  %1158 = vmatpush3.msra.mxu1 %v895_v13 }
 0x177   :  { %1124 = vmatprep.subr.mxu0 %v878_v3  ;;  %1159 = vmatprep.subr.mxu1 %v910_v14 }
 0x178   :  { %1125 = vmatpush3.msra.mxu0 %v862_v5  ;;  %1160 = vmatpush3.msra.mxu1 %v894_v15 }
 0x1d7   :  { %v640_v19 = vpop.f32.mrf.mxu0  ;;  %v711_v20 = vpop.f32.mrf.mxu1 }
 0x1d8   :  { %v641_v50 = vadd.f32 %v640_v19, %v557_v17 }
 0x1d9   :  { %v642_v58 = vpop.f32.mrf.mxu0  ;;  %v713_v21 = vpop.f32.mrf.mxu1 }
 0x1da   :  { %v643_v49 = vadd.f32 %v642_v58, %v561_v18  ;;  %v712_v55 = vadd.f32 %v711_v20, %v641_v50 }
 0x1dc   :  { %v714_v22 = vadd.f32 %v713_v21, %v643_v49  ;;  %v858_v24 = vmax.f32 %v712_v55, 0.0 }
 0x1de   :  { %v859_v23 = vmax.f32 %v714_v22, 0.0 }
 0x1e0   :  { %997 = vmatprep.mubr.f32.mxu0 %v859_v23 }
 0x1e1   :  { %998 = vmatmul.mubr.f32.vlgmr.msra.gmra.mxu0 %v858_v24 }
 0x218   :  { %v782_v26 = vpop.f32.mrf.mxu0  ;;  %v853_v41 = vpop.f32.mrf.mxu1 }
 0x219   :  { %v783_v27 = vadd.f32 %v782_v26, %v565_v25 }
 0x21a   :  { %v784_v28 = vpop.f32.mrf.mxu0  ;;  %v855_v31 = vpop.f32.mrf.mxu1 }
 0x21b   :  { %v785_v29 = vadd.f32 %v784_v28, %v569_v39  ;;  %v854_v30 = vadd.f32 %v853_v41, %v783_v27 }
 0x21d   :  { %v856_v32 = vadd.f32 %v855_v31, %v785_v29  ;;  %v860_v34 = vmax.f32 %v854_v30, 0.0 }
 0x21f   :  { %v861_v33 = vmax.f32 %v856_v32, 0.0 }
 0x221   :  { %1067 = vmatprep.mubr.f32.mxu1 %v861_v33 }
 0x222   :  { %1068 = vmatmul.mubr.f32.vlgmr.msra.gmra.mxu1 %v860_v34 }
 0x2a1   :  { %v1126_v35 = vpop.f32.mrf.mxu0 }
 0x2a3   :  { %v1127_v36 = vpop.f32.mrf.mxu0 }
 0x2a4   :  { %v1128_v40 = vadd.f32 %v1127_v36, %v1126_v35 }
 0x2a6   :  { %v1000_v43 = vadd.f32 %v1128_v40, %v1093_v37 }
 0x2e2   :  { %v1161_v38 = vpop.f32.mrf.mxu1 }
 0x2e4   :  { %v1162_v42 = vpop.f32.mrf.mxu1 }
 0x2e5   :  { %v1163_v44 = vadd.f32 %v1162_v42, %v1161_v38 }
 0x2e7   :  { %v1070_v45 = vadd.f32 %v1163_v44, %v1000_v43 }
 0x2e9   :  { %1073 = vst [vmem:[#allocation11] sm:$0xff] %v1070_v45 }
 0x2ea   :  { %1286 = shalt.err (!%p1283_p1)
}
 0x2eb   :  { %1083 = dma.vmem_to_hbm [thread:$0]  %s1081_s29, 128, %s1421_s7, [#allocation4]  }
 0x2ec   :  { %1301 = dma.done.wait [#allocation4], 128  }
 0x2ed   :  { %1302 = vsyncadd [#allocation4], 4294967168 }
 0x2ee   :  { %1087 = vsyncpa [#allocation3], 1 }
 0x2ef   :  { %1088 = vsyncpa [#allocation6], 1 }
 0x2f0   :  { %1089 = vsyncpa [#allocation9], 1 }
 0x2f1   :  { %1090 = vsyncpa [#allocation4], 1 }

</bundles_post_ra>
